<compile_context>
chip_gen: v5e
topology: v5e:2x2
jax: 0.10.0
libtpu: 0.0.40
codegen_flags: <defaults>
</compile_context>

<pallas_src>
import functools

import jax
import jax.numpy as jnp
from jax.experimental import pallas as pl
from jax.experimental.pallas import tpu as pltpu


# ---------------- fused kernel ----------------

def _fused_encoder_kernel(*refs, act):
    # refs = (x_ref, w0, b0, w1, b1, ..., wL, bL, o_ref)
    x_ref, o_ref = refs[0], refs[-1]
    wb_refs = refs[1:-1]
    n_layers = len(wb_refs) // 2

    y = x_ref[...].astype(jnp.float32)
    for l in range(n_layers):
        w = wb_refs[2 * l][...]
        b = wb_refs[2 * l + 1][...]          # (1, dout) -> broadcasts over rows
        y = jnp.dot(y, w, preferred_element_type=jnp.float32) + b
        if act == "relu":
            y = jnp.maximum(y, 0.0)
        elif act == "elu":
            y = jnp.where(y > 0.0, y, jnp.expm1(jnp.minimum(y, 0.0)))
        else:
            raise ValueError(f"unknown activation {act}")
    o_ref[...] = y.astype(o_ref.dtype)


def fused_encoder(x, weights, biases, *, act="relu", tb=1024):
    """out = act(...act(act(x @ W0 + b0) @ W1 + b1)... @ WL + bL), one kernel."""
    B, din = x.shape
    dout = weights[-1].shape[1]

    if B <= tb:
        tb = B                               # single full-batch block
    else:
        tb = max(8, (tb // 8) * 8)           # capped tile, multiple of 8

    in_specs = [pl.BlockSpec((tb, din), lambda i: (i, 0))]
    args = [x]
    for w, b in zip(weights, biases):
        b2 = b.reshape(1, -1)
        # Constant block index -> weights/biases DMA'd once, resident in VMEM.
        in_specs.append(pl.BlockSpec(w.shape, lambda i: (0, 0)))
        in_specs.append(pl.BlockSpec(b2.shape, lambda i: (0, 0)))
        args += [w, b2]

    return pl.pallas_call(
        functools.partial(_fused_encoder_kernel, act=act),
        out_shape=jax.ShapeDtypeStruct((B, dout), x.dtype),
        grid=(pl.cdiv(B, tb),),
        in_specs=in_specs,
        out_specs=pl.BlockSpec((tb, dout), lambda i: (i, 0)),
        compiler_params=pltpu.CompilerParams(
            dimension_semantics=("parallel",)),
    )(*args)


# ---------------- parameter setup + host-side packing (plain JAX glue) ----------------

def init_linear_params(key, din, dout, dtype=jnp.float32):
    kw, kb = jax.random.split(key)
    scale = 1.0 / float(din) ** 0.5
    w = jax.random.uniform(kw, (din, dout), dtype, -scale, scale)   # [in, out]
    b = jax.random.uniform(kb, (dout,), dtype, -scale, scale)
    return w, b


def init_mlp_base(key, in_dim, hidden_dims):
    params = []
    d = in_dim
    for h in hidden_dims:
        key, sub = jax.random.split(key)
        params.append(init_linear_params(sub, d, h))
        d = h
    return params


def pack_encoder_params(params):
    """Block-diagonal-pack the two MLP bases per layer; append the final proj.

    Do this ONCE at parameter-preparation time; the packed weights are what
    the kernel consumes every forward call.
    """
    weights, biases = [], []
    for (ws, bs), (wh, bh) in zip(params["proprio_base"], params["height_base"]):
        w = jnp.zeros((ws.shape[0] + wh.shape[0], ws.shape[1] + wh.shape[1]),
                      ws.dtype)
        w = w.at[:ws.shape[0], :ws.shape[1]].set(ws)
        w = w.at[ws.shape[0]:, ws.shape[1]:].set(wh)
        weights.append(w)
        biases.append(jnp.concatenate([bs, bh]))
    wp, bp = params["overall_proj"]
    weights.append(wp)
    biases.append(bp)
    return weights, biases


def make_encoder_forward(params, cfg, *, tb=1024):
    """Returns a jitted forward(x) closure over pre-packed parameters."""
    weights, biases = pack_encoder_params(params)
    weights = [jnp.asarray(w) for w in weights]
    biases = [jnp.asarray(b) for b in biases]

    @jax.jit
    def forward(x):
        # x = [state | height]; block-diagonal layers keep state-first
        # ordering, matching torch.cat([state_out, height_out], dim=-1).
        return fused_encoder(x, weights, biases, act=cfg["activation"], tb=tb)

    return forward


# ---------------- pure-JAX reference for correctness ----------------

def _act_ref(y, act):
    if act == "relu":
        return jnp.maximum(y, 0.0)
    if act == "elu":
        return jnp.where(y > 0.0, y, jnp.expm1(y))
    raise ValueError(f"unknown activation {act}")


def reference_forward(params, x, cfg):
    act = cfg["activation"]
    sd = cfg["state_dim"]
    s, h = x[..., :sd], x[..., sd:]
    for w, b in params["proprio_base"]:
        s = _act_ref(s @ w + b, act)
    for w, b in params["height_base"]:
        h = _act_ref(h @ w + b, act)
    cat = jnp.concatenate([s, h], axis=-1)
    w, b = params["overall_proj"]
    return _act_ref(cat @ w + b, act)


if __name__ == "__main__":
    key = jax.random.PRNGKey(0)

    for act in ("relu", "elu"):
        cfg = dict(state_dim=16, height_dim=32, hidden_dims=[32, 32],
                   activation=act)
        key, k_p, k_h, k_o, k_x, k_x2 = jax.random.split(key, 6)

        params = {
            "proprio_base": init_mlp_base(k_p, cfg["state_dim"],
                                          cfg["hidden_dims"]),
            "height_base": init_mlp_base(k_h, cfg["height_dim"],
                                         cfg["hidden_dims"]),
            "overall_proj": init_linear_params(
                k_o, 2 * cfg["hidden_dims"][-1], 2 * cfg["hidden_dims"][-1]),
        }
        out_dim = 2 * cfg["hidden_dims"][-1]
        in_dim = cfg["state_dim"] + cfg["height_dim"]

        # small batch: single full-batch block
        forward = make_encoder_forward(params, cfg)
        x = jax.random.normal(k_x, (8, in_dim), jnp.float32)
        out = jax.block_until_ready(forward(x))
        assert out.shape == (8, out_dim), out.shape
        ref = reference_forward(params, x, cfg)
        assert jnp.allclose(out, ref, atol=1e-4, rtol=1e-4), \
            f"mismatch vs reference (act={act}, single block)"

        # larger batch with a tiny tile: exercises the tiled / multi-step
        # parallel grid path (including weight residency across grid steps)
        forward_tiled = make_encoder_forward(params, cfg, tb=8)
        x2 = jax.random.normal(k_x2, (32, in_dim), jnp.float32)
        out2 = jax.block_until_ready(forward_tiled(x2))
        assert out2.shape == (32, out_dim), out2.shape
        ref2 = reference_forward(params, x2, cfg)
        assert jnp.allclose(out2, ref2, atol=1e-4, rtol=1e-4), \
            f"mismatch vs reference (act={act}, tiled grid)"

    print("KERNEL_OK")
</pallas_src>

<mosaic_0001>
module attributes {stable_mosaic.version = 11 : i64} {
  func.func @_fused_encoder_kernel(%arg0: i32, %arg1: memref<8x48xf32, #tpu.memory_space<vmem>>, %arg2: memref<48x64xf32, #tpu.memory_space<vmem>>, %arg3: memref<1x64xf32, #tpu.memory_space<vmem>>, %arg4: memref<64x64xf32, #tpu.memory_space<vmem>>, %arg5: memref<1x64xf32, #tpu.memory_space<vmem>>, %arg6: memref<64x64xf32, #tpu.memory_space<vmem>>, %arg7: memref<1x64xf32, #tpu.memory_space<vmem>>, %arg8: memref<8x64xf32, #tpu.memory_space<vmem>>) attributes {dimension_semantics = [#tpu.dimension_semantics<parallel>], iteration_bounds = array<i64: 1>, scalar_prefetch = 0 : i64, scratch_operands = 0 : i64, tpu.core_type = #tpu.core_type<tc>, window_params = [{transform_indices = @transform_0, window_bounds = array<i64: 8, 48>}, {pipeline_mode = #tpu.pipeline_mode<synchronous>, transform_indices = @transform_1, window_bounds = array<i64: 48, 64>}, {pipeline_mode = #tpu.pipeline_mode<synchronous>, transform_indices = @transform_2, window_bounds = array<i64: 1, 64>}, {pipeline_mode = #tpu.pipeline_mode<synchronous>, transform_indices = @transform_3, window_bounds = array<i64: 64, 64>}, {pipeline_mode = #tpu.pipeline_mode<synchronous>, transform_indices = @transform_4, window_bounds = array<i64: 1, 64>}, {pipeline_mode = #tpu.pipeline_mode<synchronous>, transform_indices = @transform_5, window_bounds = array<i64: 64, 64>}, {pipeline_mode = #tpu.pipeline_mode<synchronous>, transform_indices = @transform_6, window_bounds = array<i64: 1, 64>}, {transform_indices = @transform_7, window_bounds = array<i64: 8, 64>}]} {
    %c0 = arith.constant 0 : index
    %c0_0 = arith.constant 0 : index
    %0 = vector.load %arg1[%c0, %c0_0] : memref<8x48xf32, #tpu.memory_space<vmem>>, vector<8x48xf32>
    %c0_1 = arith.constant 0 : index
    %c0_2 = arith.constant 0 : index
    %1 = vector.load %arg2[%c0_1, %c0_2] : memref<48x64xf32, #tpu.memory_space<vmem>>, vector<48x64xf32>
    %c0_3 = arith.constant 0 : index
    %c0_4 = arith.constant 0 : index
    %2 = vector.load %arg3[%c0_3, %c0_4] : memref<1x64xf32, #tpu.memory_space<vmem>>, vector<1x64xf32>
    %cst = arith.constant dense<0.000000e+00> : vector<8x64xf32>
    %3 = tpu.matmul %0, %1, %cst {dimension_numbers = #tpu.dot_dimension_numbers<[1], [0], [0], [1], [0, 0, 1, 1], [], []>} : vector<8x48xf32>, vector<48x64xf32>, vector<8x64xf32> -> vector<8x64xf32>
    %4 = vector.broadcast %2 : vector<1x64xf32> to vector<8x64xf32>
    %5 = arith.addf %3, %4 : vector<8x64xf32>
    %cst_5 = arith.constant 0.000000e+00 : f32
    %6 = vector.broadcast %cst_5 : f32 to vector<8x64xf32>
    %7 = arith.maximumf %5, %6 : vector<8x64xf32>
    %c0_6 = arith.constant 0 : index
    %c0_7 = arith.constant 0 : index
    %8 = vector.load %arg4[%c0_6, %c0_7] : memref<64x64xf32, #tpu.memory_space<vmem>>, vector<64x64xf32>
    %c0_8 = arith.constant 0 : index
    %c0_9 = arith.constant 0 : index
    %9 = vector.load %arg5[%c0_8, %c0_9] : memref<1x64xf32, #tpu.memory_space<vmem>>, vector<1x64xf32>
    %cst_10 = arith.constant dense<0.000000e+00> : vector<8x64xf32>
    %10 = tpu.matmul %7, %8, %cst_10 {dimension_numbers = #tpu.dot_dimension_numbers<[1], [0], [0], [1], [0, 0, 1, 1], [], []>} : vector<8x64xf32>, vector<64x64xf32>, vector<8x64xf32> -> vector<8x64xf32>
    %11 = vector.broadcast %9 : vector<1x64xf32> to vector<8x64xf32>
    %12 = arith.addf %10, %11 : vector<8x64xf32>
    %cst_11 = arith.constant 0.000000e+00 : f32
    %13 = vector.broadcast %cst_11 : f32 to vector<8x64xf32>
    %14 = arith.maximumf %12, %13 : vector<8x64xf32>
    %c0_12 = arith.constant 0 : index
    %c0_13 = arith.constant 0 : index
    %15 = vector.load %arg6[%c0_12, %c0_13] : memref<64x64xf32, #tpu.memory_space<vmem>>, vector<64x64xf32>
    %c0_14 = arith.constant 0 : index
    %c0_15 = arith.constant 0 : index
    %16 = vector.load %arg7[%c0_14, %c0_15] : memref<1x64xf32, #tpu.memory_space<vmem>>, vector<1x64xf32>
    %cst_16 = arith.constant dense<0.000000e+00> : vector<8x64xf32>
    %17 = tpu.matmul %14, %15, %cst_16 {dimension_numbers = #tpu.dot_dimension_numbers<[1], [0], [0], [1], [0, 0, 1, 1], [], []>} : vector<8x64xf32>, vector<64x64xf32>, vector<8x64xf32> -> vector<8x64xf32>
    %18 = vector.broadcast %16 : vector<1x64xf32> to vector<8x64xf32>
    %19 = arith.addf %17, %18 : vector<8x64xf32>
    %cst_17 = arith.constant 0.000000e+00 : f32
    %20 = vector.broadcast %cst_17 : f32 to vector<8x64xf32>
    %21 = arith.maximumf %19, %20 : vector<8x64xf32>
    %c0_18 = arith.constant 0 : index
    %c0_19 = arith.constant 0 : index
    %22 = vector.load %arg8[%c0_18, %c0_19] : memref<8x64xf32, #tpu.memory_space<vmem>>, vector<8x64xf32>
    tpu.vector_store %arg8[%c0_18, %c0_19], %21 {strides = array<i32>} : memref<8x64xf32, #tpu.memory_space<vmem>>, vector<8x64xf32>,
    return
  }
  func.func @transform_0(%arg0: i32) -> (i32, i32) {
    %c0_i32 = arith.constant 0 : i32
    %c0_i32_0 = arith.constant 0 : i32
    return %arg0, %c0_i32 : i32, i32
  }
  func.func @transform_1(%arg0: i32) -> (i32, i32) {
    %c0_i32 = arith.constant 0 : i32
    %c0_i32_0 = arith.constant 0 : i32
    %c0_i32_1 = arith.constant 0 : i32
    return %c0_i32, %c0_i32_0 : i32, i32
  }
  func.func @transform_2(%arg0: i32) -> (i32, i32) {
    %c0_i32 = arith.constant 0 : i32
    %c0_i32_0 = arith.constant 0 : i32
    %c0_i32_1 = arith.constant 0 : i32
    return %c0_i32, %c0_i32_0 : i32, i32
  }
  func.func @transform_3(%arg0: i32) -> (i32, i32) {
    %c0_i32 = arith.constant 0 : i32
    %c0_i32_0 = arith.constant 0 : i32
    %c0_i32_1 = arith.constant 0 : i32
    return %c0_i32, %c0_i32_0 : i32, i32
  }
  func.func @transform_4(%arg0: i32) -> (i32, i32) {
    %c0_i32 = arith.constant 0 : i32
    %c0_i32_0 = arith.constant 0 : i32
    %c0_i32_1 = arith.constant 0 : i32
    return %c0_i32, %c0_i32_0 : i32, i32
  }
  func.func @transform_5(%arg0: i32) -> (i32, i32) {
    %c0_i32 = arith.constant 0 : i32
    %c0_i32_0 = arith.constant 0 : i32
    %c0_i32_1 = arith.constant 0 : i32
    return %c0_i32, %c0_i32_0 : i32, i32
  }
  func.func @transform_6(%arg0: i32) -> (i32, i32) {
    %c0_i32 = arith.constant 0 : i32
    %c0_i32_0 = arith.constant 0 : i32
    %c0_i32_1 = arith.constant 0 : i32
    return %c0_i32, %c0_i32_0 : i32, i32
  }
  func.func @transform_7(%arg0: i32) -> (i32, i32) {
    %c0_i32 = arith.constant 0 : i32
    %c0_i32_0 = arith.constant 0 : i32
    return %arg0, %c0_i32 : i32, i32
  }
}

</mosaic_0001>

<bundles_post_ra>
// kernel: forward.1
= control target key start
LH: loop header
LB: loop body
LE: loop exit
PB: predicated region body
PF: predicated region fallthrough
CT: control target
= control target key end

     0   :  { %12 = vsyncpa [#allocation3], 0  ;;  %s432_s0 = inlined_call_operand.hbm [shape: f32[8,48], index: 0, kind: input, shape index: {}]   ;;  %s433_s1 = inlined_call_operand.hbm [shape: f32[48,64], index: 1, kind: input, shape index: {}]   ;;  %s434_s2 = inlined_call_operand.vmem [shape: f32[1,64], index: 2, kind: input, shape index: {}]   ;;  %s435_s3 = inlined_call_operand.hbm [shape: f32[64,64], index: 3, kind: input, shape index: {}]   ;;  %s436_s4 = inlined_call_operand.vmem [shape: f32[1,64], index: 4, kind: input, shape index: {}]   ;;  %s437_s5 = inlined_call_operand.hbm [shape: f32[64,64], index: 5, kind: input, shape index: {}]   ;;  %s438_s6 = inlined_call_operand.vmem [shape: f32[1,64], index: 6, kind: input, shape index: {}]   ;;  %s439_s7 = inlined_call_operand.hbm [shape: f32[8,64], index: 7, kind: output, shape index: {}]  }
   0x1   :  { %13 = vsyncpa [#allocation6], 0 }
   0x2   :  { %14 = vsyncpa [#allocation9], 0  ;;  %s31_s26 = sshll.u32 %s433_s1, 4  ;;  %s32_s26 = int_to_ptr.hbm [resolvable:$true] %s31_s26 }
   0x3   :  { %15 = vsyncpa [#allocation4], 0  ;;  %s358_s27 = smov [#allocation5]   ;;  %s21_s8 = sshll.u32 %s432_s0, 4  ;;  %s22_s8 = int_to_ptr.hbm [resolvable:$true] %s21_s8 }
   0x4   :  { %s33_s28 = sshll.u32 %s358_s27, 4  ;;  %s359_s9 = smov 128   ;;  %s34_s28 = int_to_ptr.vmem [resolvable:$true] %s33_s28 }
   0x5   :  { %s360_s10 = smov 8   ;;  %s361_s11 = smov [#allocation2]  }
   0x6   :  { %39 = dma.hbm_to_vmem [thread:$0]  %s32_s26, 768, %s34_s28, [#allocation6], %s359_s9, %s359_s9, %s360_s10  }
   0x7   :  { %s23_s12 = sshll.u32 %s361_s11, 4  ;;  %s46_s15 = sshll.u32 %s435_s3, 4  ;;  %s24_s12 = int_to_ptr.vmem [resolvable:$true] %s23_s12  ;;  %s47_s15 = int_to_ptr.hbm [resolvable:$true] %s46_s15 }
   0x8   :  { %26 = dma.hbm_to_vmem [thread:$0]  %s22_s8, 128, %s24_s12, [#allocation3]  }
   0x9   :  { %s61_s17 = sshll.u32 %s437_s5, 4  ;;  %s362_s18 = smov [#allocation7]   ;;  %s62_s17 = int_to_ptr.hbm [resolvable:$true] %s61_s17 }
   0xa   :  { %s48_s19 = sshll.u32 %s362_s18, 4  ;;  %s363_s0 = smov [#allocation8]   ;;  %s49_s19 = int_to_ptr.vmem [resolvable:$true] %s48_s19 }
   0xb   :  { %54 = dma.hbm_to_vmem [thread:$0]  %s47_s15, 1024, %s49_s19, [#allocation6], %s359_s9, %s359_s9, %s360_s10  }
   0xc   :  { %s63_s20 = sshll.u32 %s363_s0, 4  ;;  %s64_s20 = int_to_ptr.vmem [resolvable:$true] %s63_s20 }
   0xd   :  { %69 = dma.hbm_to_vmem [thread:$0]  %s62_s17, 1024, %s64_s20, [#allocation9], %s359_s9, %s359_s9, %s360_s10  }
   0xe   :  { %350 = dma.done.wait [#allocation3], 128  }
   0xf   :  { %351 = vsyncadd [#allocation3], 4294967168 }
  0x10   :  { %352 = dma.done.wait [#allocation6], 1792  }
  0x11   :  { %353 = vsyncadd [#allocation6], 4294965504 }
  0x12   :  { %354 = dma.done.wait [#allocation9], 1024  }
  0x13   :  { %355 = vsyncadd [#allocation9], 4294966272  ;;  %v94_v0 = vld [vmem:[#allocation5 + $0x28] sm:$0xff]  ;;  %v93_v1 = vld [vmem:[#allocation5 + $0x20] sm:$0xff]  ;;  %vm99_vm0 = vcmask 392192   ;;  %vm136_vm1 = vcmask 523264  }
  0x14   :  { %113 = vmatpush.msra.mxu0 %v94_v0  ;;  %v92_v2 = vld [vmem:[#allocation5 + $0x18] sm:$0xff]  ;;  %v131_v3 = vld [vmem:[#allocation7 + $0x38] sm:$0xff]  ;;  %v130_v4 = vld [vmem:[#allocation7 + $0x30] sm:$0xff]  ;;  %s364_s24 = smov [#allocation10]   ;;  %s205_s28 = sshll.u32 %s439_s7, 4  ;;  %s206_s28 = int_to_ptr.hbm [resolvable:$true] %s205_s28 }
  0x15   :  { %v91_v5 = vld [vmem:[#allocation5 + $0x10] sm:$0xff]  ;;  %148 = vmatpush.msra.mxu1 %v131_v3  ;;  %v129_v6 = vld [vmem:[#allocation7 + $0x28] sm:$0xff]  ;;  %v90_v7 = vld [vmem:[#allocation5 + $0x8] sm:$0xff]  ;;  %s203_s25 = sshll.u32 %s364_s24, 4  ;;  %s204_s25 = int_to_ptr.vmem [resolvable:$true] %s203_s25 }
  0x16   :  { %114 = vmatpush.msra.mxu0 %v93_v1  ;;  %v128_v8 = vld [vmem:[#allocation7 + $0x20] sm:$0xff]  ;;  %v89_v9 = vld [vmem:[#allocation5] sm:$0xff]  ;;  %v127_v10 = vld [vmem:[#allocation7 + $0x18] sm:$0xff] }
  0x17   :  { %149 = vmatpush.msra.mxu1 %v130_v4  ;;  %v88_v11 = vld [vmem:[#allocation2] sm:$0xff]  ;;  %v126_v12 = vld [vmem:[#allocation7 + $0x10] sm:$0xff]  ;;  %v124_v14 = vld [vmem:[#allocation7] sm:$0xff] }
  0x18   :  { %115 = vmatpush.msra.mxu0 %v92_v2  ;;  %v125_v13 = vld [vmem:[#allocation7 + $0x8] sm:$0xff]  ;;  %v168_v15 = vld [vmem:[#allocation8 + $0x38] sm:$0xff]  ;;  %v167_v16 = vld [vmem:[#allocation8 + $0x30] sm:$0xff] }
  0x19   :  { %150 = vmatpush.msra.mxu1 %v129_v6  ;;  %184 = vmatpush.msra.mxu2 %v168_v15  ;;  %v166_v17 = vld [vmem:[#allocation8 + $0x28] sm:$0xff]  ;;  %v165_v18 = vld [vmem:[#allocation8 + $0x20] sm:$0xff]  ;;  %v164_v19 = vld [vmem:[#allocation8 + $0x18] sm:$0xff] }
  0x1a   :  { %116 = vmatpush.msra.mxu0 %v91_v5  ;;  %v227_v20 = vld [vmem:[%s434_s2] ss:$0 sm:$0xff]  ;;  %v163_v24 = vld [vmem:[#allocation8 + $0x10] sm:$0xff]  ;;  %v161_v26 = vld [vmem:[#allocation8] sm:$0xff] }
  0x1b   :  { %151 = vmatpush.msra.mxu1 %v128_v8  ;;  %185 = vmatpush.msra.mxu2 %v167_v16  ;;  %v162_v25 = vld [vmem:[#allocation8 + $0x8] sm:$0xff] }
  0x1c   :  { %117 = vmatpush.msra.mxu0 %v90_v7  ;;  %v228_v27 = vld [vmem:[%s436_s4] ss:$0 sm:$0xff] }
  0x1d   :  { %152 = vmatpush.msra.mxu1 %v127_v10  ;;  %186 = vmatpush.msra.mxu2 %v166_v17  ;;  %v229_v31 = vld [vmem:[%s438_s6] ss:$0 sm:$0xff] }
  0x1e   :  { %118 = vmatpush.msra.mxu0 %v89_v9 }
  0x1f   :  { %217 = vmatmul.msk.f32.vlgmr.msra.gmra.mxu0 %vm99_vm0, %v88_v11  ;;  %153 = vmatpush.msra.mxu1 %v126_v12 }
  0x20   :  { %187 = vmatpush.msra.mxu2 %v165_v18 }
  0x21   :  { %154 = vmatpush.msra.mxu1 %v125_v13 }
  0x22   :  { %188 = vmatpush.msra.mxu2 %v164_v19 }
  0x23   :  { %155 = vmatpush.msra.mxu1 %v124_v14 }
  0x24   :  { %189 = vmatpush.msra.mxu2 %v163_v24 }
  0x26   :  { %190 = vmatpush.msra.mxu2 %v162_v25 }
  0x28   :  { %191 = vmatpush.msra.mxu2 %v161_v26 }
  0x9c   :  { %v120_v21 = vpop.f32.mrf.mxu0 }
  0x9d   :  { %v121_v22 = vadd.f32 %v227_v20, %v120_v21 }
  0x9f   :  { %v123_v23 = vmax.f32 %v121_v22, 0.0 }
  0xa1   :  { %218 = vmatmul.msk.f32.vlgmr.msra.gmra.mxu1 %vm136_vm1, %v123_v23 }
 0x11e   :  { %v157_v28 = vpop.f32.mrf.mxu1 }
 0x11f   :  { %v158_v29 = vadd.f32 %v228_v27, %v157_v28 }
 0x121   :  { %v160_v30 = vmax.f32 %v158_v29, 0.0 }
 0x123   :  { %219 = vmatmul.msk.f32.vlgmr.msra.gmra.mxu2 %vm136_vm1, %v160_v30 }
 0x1a6   :  { %v193_v32 = vpop.f32.mrf.mxu2 }
 0x1a7   :  { %v194_v33 = vadd.f32 %v229_v31, %v193_v32 }
 0x1a9   :  { %v196_v34 = vmax.f32 %v194_v33, 0.0 }
 0x1ab   :  { %197 = vst.msk [vmem:[#allocation10] sm:$0xff] %vm136_vm1, %v196_v34 }
 0x1ac   :  { %208 = dma.vmem_to_hbm [thread:$0]  %s204_s25, 128, %s206_s28, [#allocation4]  }
 0x1ad   :  { %356 = dma.done.wait [#allocation4], 128  }
 0x1ae   :  { %357 = vsyncadd [#allocation4], 4294967168 }
 0x1af   :  { %213 = vsyncpa [#allocation3], 1 }
 0x1b0   :  { %214 = vsyncpa [#allocation6], 1 }
 0x1b1   :  { %215 = vsyncpa [#allocation9], 1 }
 0x1b2   :  { %216 = vsyncpa [#allocation4], 1 }

</bundles_post_ra>
